<compile_context>
chip_gen: v7x
topology: tpu7x:2x2x1
jax: 0.10.0
libtpu: 0.0.40
codegen_flags: <defaults>
</compile_context>

<pallas_src>
import jax
import jax.numpy as jnp
from jax.experimental import pallas as pl
from jax.experimental.pallas import tpu as pltpu

_MIB = 1024 * 1024


def _round_up(x, m):
    return (x + m - 1) // m * m


def _vmem_budget_bytes():
    """~75% of per-core VMEM (48 MiB on v7x, 96 MiB on v5e/v6e)."""
    try:
        cap = pltpu.get_tpu_info().vmem_capacity_bytes
    except Exception:  # hardware-info query only; conservative v7x default
        cap = 64 * _MIB
    return (int(cap) * 3) // 4


# --------------------------------------------------------------------------- kernels
def _ffn_kernel_resident(x_ref, w1_ref, b1_ref, w2_ref, b2_ref, o_ref):
    # x_ref : (tm, Dp)  input dtype; cast to bf16 in-kernel (VPU cast hides under MXU)
    # w1_ref: (Dp, Hp)  bf16, grid-invariant (single-buffered)
    # b1_ref: (1, Hp)   f32
    # w2_ref: (Hp, Dp)  bf16, grid-invariant (single-buffered)
    # b2_ref: (1, Dp)   f32
    xb = x_ref[...].astype(w1_ref.dtype)
    h = jnp.dot(xb, w1_ref[...], preferred_element_type=jnp.float32)
    h = jnp.maximum(h + b1_ref[...], 0.0)          # fc1 bias + ReLU (dropout = identity)
    h = h.astype(w2_ref.dtype)                     # intentional bf16 round-trip
    y = jnp.dot(h, w2_ref[...], preferred_element_type=jnp.float32) + b2_ref[...]
    o_ref[...] = y.astype(o_ref.dtype)


def _ffn_kernel_tiled(x_ref, w1_ref, b1_ref, w2_ref, b2_ref, o_ref, acc_ref):
    # Hidden-dim-tiled variant; hidden axis is grid axis 1 ("arbitrary", reduction).
    # x_ref : (tm, Dp)   input dtype (invariant across k)
    # w1_ref: (Dp, th)   bf16 slice, streamed (double-buffered)
    # b1_ref: (1, th)    f32 slice
    # w2_ref: (th, Dp)   bf16 slice, streamed
    # b2_ref: (1, Dp)    f32 (grid-invariant)
    # acc_ref: (tm, Dp)  f32 accumulator scratch
    k = pl.program_id(1)

    @pl.when(k == 0)
    def _():
        acc_ref[...] = jnp.zeros_like(acc_ref)

    xb = x_ref[...].astype(w1_ref.dtype)
    h = jnp.dot(xb, w1_ref[...], preferred_element_type=jnp.float32)
    h = jnp.maximum(h + b1_ref[...], 0.0)          # ReLU is elementwise over hidden -> tileable
    h = h.astype(w2_ref.dtype)
    acc_ref[...] += jnp.dot(h, w2_ref[...], preferred_element_type=jnp.float32)

    @pl.when(k == pl.num_programs(1) - 1)
    def _():
        o_ref[...] = (acc_ref[...] + b2_ref[...]).astype(o_ref.dtype)


# --------------------------------------------------------------------------- wrapper
def prepare_ffn_params(w1, b1, w2, b2, *, compute_dtype=jnp.bfloat16, lane_align=128):
    """One-time pad + cast of the FFN weights (hoisted out of the per-call hot path).

    Weights are (in_dim, out_dim), i.e. transposed vs. torch.nn.Linear.weight.
    """
    d_model, hidden = w1.shape
    Dp = _round_up(d_model, lane_align)
    Hp = _round_up(hidden, lane_align)

    def pad2(a, rows, cols):
        pr, pc = rows - a.shape[0], cols - a.shape[1]
        return a if (pr == 0 and pc == 0) else jnp.pad(a, ((0, pr), (0, pc)))

    return dict(
        w1=pad2(w1, Dp, Hp).astype(compute_dtype),
        w2=pad2(w2, Hp, Dp).astype(compute_dtype),
        b1=pad2(b1.reshape(1, -1).astype(jnp.float32), 1, Hp),
        b2=pad2(b2.reshape(1, -1).astype(jnp.float32), 1, Dp),
        d_model=d_model, hidden=hidden, Dp=Dp, Hp=Hp,
        compute_dtype=compute_dtype,
    )


def positionwise_ffn(x, params, *, tm=256, hidden_tile=None, out_dtype=None):
    """x: (..., d_model) -> (..., d_model). fc1 -> ReLU -> (dropout=id) -> fc2.

    `params` comes from prepare_ffn_params(). `hidden_tile` forces the hidden-tiled
    path with that tile size (must divide Hp); by default the path is chosen
    statically from the VMEM budget.
    """
    d_model, hidden = params["d_model"], params["hidden"]
    Dp, Hp = params["Dp"], params["Hp"]
    w1p, b1p, w2p, b2p = params["w1"], params["b1"], params["w2"], params["b2"]
    compute_dtype = params["compute_dtype"]

    orig_shape = x.shape
    out_dtype = x.dtype if out_dtype is None else out_dtype
    assert orig_shape[-1] == d_model, "x last dim must equal d_model"

    xf = x.reshape(-1, d_model)
    M = xf.shape[0]

    # Row tile: multiple of 16 (valid sublane packing for f32 and bf16).
    tm = max(16, _round_up(tm, 16))
    tm = min(tm, _round_up(M, 16))
    Mp = _round_up(M, tm)
    if Mp != M or Dp != d_model:
        xf = jnp.pad(xf, ((0, Mp - M), (0, Dp - d_model)))

    cbytes = jnp.dtype(compute_dtype).itemsize
    xbytes = jnp.dtype(xf.dtype).itemsize
    obytes = jnp.dtype(out_dtype).itemsize
    budget = _vmem_budget_bytes()

    def resident_bytes():
        return (2 * Dp * Hp * cbytes            # W1 + W2 resident (single-buffered)
                + (Hp + Dp) * 4                 # biases f32
                + 2 * tm * Dp * xbytes          # x tile, double-buffered
                + 2 * tm * Dp * obytes          # out tile, double-buffered
                + tm * Hp * (4 + cbytes))       # f32 intermediate + bf16 copy

    def tiled_bytes(th):
        return (2 * 2 * Dp * th * cbytes        # streamed W1/W2 slices, double-buffered
                + 2 * th * 4 + Dp * 4           # b1 slices + resident b2
                + 2 * tm * Dp * xbytes
                + 2 * tm * Dp * obytes
                + tm * Dp * 4                   # f32 accumulator scratch
                + tm * th * (4 + cbytes))       # f32 intermediate + bf16 copy

    use_tiled = hidden_tile is not None or resident_bytes() > budget
    if use_tiled:
        if hidden_tile is not None:
            th = int(hidden_tile)
            assert th % 128 == 0 and Hp % th == 0, "hidden_tile must be a 128-multiple dividing Hp"
        else:
            th = 128
            for cand in (2048, 1024, 512, 256, 128):
                if cand <= Hp and Hp % cand == 0 and tiled_bytes(cand) <= budget:
                    th = cand
                    break
        est = tiled_bytes(th)
    else:
        th = Hp
        est = resident_bytes()

    vmem_limit = int(min(budget, max(int(1.5 * est), 32 * _MIB)))

    cost = pl.CostEstimate(
        flops=4 * Mp * Dp * Hp + 3 * Mp * Hp + Mp * Dp,
        transcendentals=0,
        bytes_accessed=(Mp * Dp * xbytes + (w1p.size + w2p.size) * cbytes
                        + (b1p.size + b2p.size) * 4 + Mp * Dp * obytes),
    )

    if use_tiled:
        grid = (Mp // tm, Hp // th)
        grid_spec = pltpu.PrefetchScalarGridSpec(
            num_scalar_prefetch=0,
            grid=grid,
            in_specs=[
                pl.BlockSpec((tm, Dp), lambda i, k: (i, 0)),                       # x row tile
                pl.BlockSpec((Dp, th), lambda i, k: (0, k)),                       # W1 slice (streamed)
                pl.BlockSpec((1, th), lambda i, k: (0, k)),                        # b1 slice
                pl.BlockSpec((th, Dp), lambda i, k: (k, 0)),                       # W2 slice (streamed)
                pl.BlockSpec((1, Dp), lambda i, k: (0, 0),
                             pipeline_mode=pl.Buffered(1)),                        # b2 (invariant)
            ],
            out_specs=pl.BlockSpec((tm, Dp), lambda i, k: (i, 0)),
            scratch_shapes=[pltpu.VMEM((tm, Dp), jnp.float32)],
        )
        kernel = _ffn_kernel_tiled
        dim_sem = ("parallel", "arbitrary")
    else:
        grid = (Mp // tm,)
        grid_spec = pltpu.PrefetchScalarGridSpec(
            num_scalar_prefetch=0,
            grid=grid,
            in_specs=[
                pl.BlockSpec((tm, Dp), lambda i: (i, 0)),                          # x row tile
                pl.BlockSpec((Dp, Hp), lambda i: (0, 0), pipeline_mode=pl.Buffered(1)),  # W1 resident
                pl.BlockSpec((1, Hp), lambda i: (0, 0), pipeline_mode=pl.Buffered(1)),   # b1
                pl.BlockSpec((Hp, Dp), lambda i: (0, 0), pipeline_mode=pl.Buffered(1)),  # W2 resident
                pl.BlockSpec((1, Dp), lambda i: (0, 0), pipeline_mode=pl.Buffered(1)),   # b2
            ],
            out_specs=pl.BlockSpec((tm, Dp), lambda i: (i, 0)),
        )
        kernel = _ffn_kernel_resident
        dim_sem = ("parallel",)

    out = pl.pallas_call(
        kernel,
        out_shape=jax.ShapeDtypeStruct((Mp, Dp), out_dtype),
        grid_spec=grid_spec,
        cost_estimate=cost,
        compiler_params=pltpu.CompilerParams(
            dimension_semantics=dim_sem,
            vmem_limit_bytes=vmem_limit,
        ),
    )(xf, w1p, b1p, w2p, b2p)

    return out[:M, :d_model].reshape(orig_shape).astype(out_dtype)


# --------------------------------------------------------------------------- helpers
def init_params(key, d_model, hidden, dtype=jnp.float32):
    """Deterministic init mirroring nn.Linear default (uniform +- 1/sqrt(fan_in))."""
    k1, k2, k3, k4 = jax.random.split(key, 4)
    lim1 = 1.0 / (d_model ** 0.5)
    lim2 = 1.0 / (hidden ** 0.5)
    # stored as (in, out) = transpose of torch Linear weight (out, in)
    w1 = jax.random.uniform(k1, (d_model, hidden), dtype, -lim1, lim1)
    b1 = jax.random.uniform(k2, (hidden,), dtype, -lim1, lim1)
    w2 = jax.random.uniform(k3, (hidden, d_model), dtype, -lim2, lim2)
    b2 = jax.random.uniform(k4, (d_model,), dtype, -lim2, lim2)
    return w1, b1, w2, b2


def _reference(x, w1, b1, w2, b2):
    """Pure-JAX reference with the same bf16-inputs / f32-accumulation numerics."""
    h = jnp.dot(x.astype(jnp.bfloat16), w1.astype(jnp.bfloat16),
                preferred_element_type=jnp.float32) + b1
    h = jnp.maximum(h, 0.0)
    return jnp.dot(h.astype(jnp.bfloat16), w2.astype(jnp.bfloat16),
                   preferred_element_type=jnp.float32) + b2


if __name__ == "__main__":
    key = jax.random.PRNGKey(0)
    batch, seq = 2, 8

    # --- test 1: small FFN, resident-weights path -----------------------------
    d_model, hidden = 32, 64
    kx, kp = jax.random.split(key)
    x = jax.random.normal(kx, (batch, seq, d_model), jnp.float32)
    w1, b1, w2, b2 = init_params(kp, d_model, hidden)
    params = prepare_ffn_params(w1, b1, w2, b2)   # pad/cast hoisted out of hot path

    y = jax.block_until_ready(positionwise_ffn(x, params))
    ref = _reference(x, w1, b1, w2, b2)
    assert y.shape == x.shape
    assert jnp.allclose(y, ref, atol=2e-2, rtol=2e-2), "resident path mismatch vs reference"

    # --- test 2: force the hidden-tiled (streamed-weights) path ---------------
    d_model2, hidden2 = 64, 320           # Hp = 384 -> 3 hidden tiles of 128
    kx2, kp2 = jax.random.split(kp)
    x2 = jax.random.normal(kx2, (batch, seq, d_model2), jnp.float32)
    w1b, b1b, w2b, b2b = init_params(kp2, d_model2, hidden2)
    params2 = prepare_ffn_params(w1b, b1b, w2b, b2b)

    y2 = jax.block_until_ready(positionwise_ffn(x2, params2, hidden_tile=128))
    ref2 = _reference(x2, w1b, b1b, w2b, b2b)
    assert y2.shape == x2.shape
    assert jnp.allclose(y2, ref2, atol=2e-2, rtol=2e-2), "tiled path mismatch vs reference"

    print("KERNEL_OK")
</pallas_src>

<mosaic_0001>
module attributes {stable_mosaic.version = 11 : i64} {
  func.func @_ffn_kernel_resident(%arg0: i32, %arg1: memref<16x128xf32, #tpu.memory_space<vmem>>, %arg2: memref<128x128xbf16, #tpu.memory_space<vmem>>, %arg3: memref<1x128xf32, #tpu.memory_space<vmem>>, %arg4: memref<128x128xbf16, #tpu.memory_space<vmem>>, %arg5: memref<1x128xf32, #tpu.memory_space<vmem>>, %arg6: memref<16x128xf32, #tpu.memory_space<vmem>>) attributes {dimension_semantics = [#tpu.dimension_semantics<parallel>], iteration_bounds = array<i64: 1>, scalar_prefetch = 0 : i64, scratch_operands = 0 : i64, tpu.core_type = #tpu.core_type<tc>, window_params = [{transform_indices = @transform_0, window_bounds = array<i64: 16, 128>}, {pipeline_mode = #tpu.pipeline_mode<synchronous>, transform_indices = @transform_1, window_bounds = array<i64: 128, 128>}, {pipeline_mode = #tpu.pipeline_mode<synchronous>, transform_indices = @transform_2, window_bounds = array<i64: 1, 128>}, {pipeline_mode = #tpu.pipeline_mode<synchronous>, transform_indices = @transform_3, window_bounds = array<i64: 128, 128>}, {pipeline_mode = #tpu.pipeline_mode<synchronous>, transform_indices = @transform_4, window_bounds = array<i64: 1, 128>}, {transform_indices = @transform_5, window_bounds = array<i64: 16, 128>}]} {
    %c0 = arith.constant 0 : index
    %c0_0 = arith.constant 0 : index
    %0 = vector.load %arg1[%c0, %c0_0] : memref<16x128xf32, #tpu.memory_space<vmem>>, vector<16x128xf32>
    %1 = arith.truncf %0 : vector<16x128xf32> to vector<16x128xbf16>
    %c0_1 = arith.constant 0 : index
    %c0_2 = arith.constant 0 : index
    %2 = vector.load %arg2[%c0_1, %c0_2] : memref<128x128xbf16, #tpu.memory_space<vmem>>, vector<128x128xbf16>
    %cst = arith.constant dense<0.000000e+00> : vector<16x128xf32>
    %3 = tpu.matmul %1, %2, %cst {dimension_numbers = #tpu.dot_dimension_numbers<[1], [0], [0], [1], [0, 0, 1, 1], [], []>} : vector<16x128xbf16>, vector<128x128xbf16>, vector<16x128xf32> -> vector<16x128xf32>
    %c0_3 = arith.constant 0 : index
    %c0_4 = arith.constant 0 : index
    %4 = vector.load %arg3[%c0_3, %c0_4] : memref<1x128xf32, #tpu.memory_space<vmem>>, vector<1x128xf32>
    %5 = vector.broadcast %4 : vector<1x128xf32> to vector<16x128xf32>
    %6 = arith.addf %3, %5 : vector<16x128xf32>
    %cst_5 = arith.constant 0.000000e+00 : f32
    %7 = vector.broadcast %cst_5 : f32 to vector<16x128xf32>
    %8 = arith.maximumf %6, %7 : vector<16x128xf32>
    %9 = arith.truncf %8 : vector<16x128xf32> to vector<16x128xbf16>
    %c0_6 = arith.constant 0 : index
    %c0_7 = arith.constant 0 : index
    %10 = vector.load %arg4[%c0_6, %c0_7] : memref<128x128xbf16, #tpu.memory_space<vmem>>, vector<128x128xbf16>
    %cst_8 = arith.constant dense<0.000000e+00> : vector<16x128xf32>
    %11 = tpu.matmul %9, %10, %cst_8 {dimension_numbers = #tpu.dot_dimension_numbers<[1], [0], [0], [1], [0, 0, 1, 1], [], []>} : vector<16x128xbf16>, vector<128x128xbf16>, vector<16x128xf32> -> vector<16x128xf32>
    %c0_9 = arith.constant 0 : index
    %c0_10 = arith.constant 0 : index
    %12 = vector.load %arg5[%c0_9, %c0_10] : memref<1x128xf32, #tpu.memory_space<vmem>>, vector<1x128xf32>
    %13 = vector.broadcast %12 : vector<1x128xf32> to vector<16x128xf32>
    %14 = arith.addf %11, %13 : vector<16x128xf32>
    %c0_11 = arith.constant 0 : index
    %c0_12 = arith.constant 0 : index
    %15 = vector.load %arg6[%c0_11, %c0_12] : memref<16x128xf32, #tpu.memory_space<vmem>>, vector<16x128xf32>
    tpu.vector_store %arg6[%c0_11, %c0_12], %14 {strides = array<i32>} : memref<16x128xf32, #tpu.memory_space<vmem>>, vector<16x128xf32>,
    return
  }
  func.func @transform_0(%arg0: i32) -> (i32, i32) {
    %c0_i32 = arith.constant 0 : i32
    %c0_i32_0 = arith.constant 0 : i32
    return %arg0, %c0_i32 : i32, i32
  }
  func.func @transform_1(%arg0: i32) -> (i32, i32) {
    %c0_i32 = arith.constant 0 : i32
    %c0_i32_0 = arith.constant 0 : i32
    %c0_i32_1 = arith.constant 0 : i32
    return %c0_i32, %c0_i32_0 : i32, i32
  }
  func.func @transform_2(%arg0: i32) -> (i32, i32) {
    %c0_i32 = arith.constant 0 : i32
    %c0_i32_0 = arith.constant 0 : i32
    %c0_i32_1 = arith.constant 0 : i32
    return %c0_i32, %c0_i32_0 : i32, i32
  }
  func.func @transform_3(%arg0: i32) -> (i32, i32) {
    %c0_i32 = arith.constant 0 : i32
    %c0_i32_0 = arith.constant 0 : i32
    %c0_i32_1 = arith.constant 0 : i32
    return %c0_i32, %c0_i32_0 : i32, i32
  }
  func.func @transform_4(%arg0: i32) -> (i32, i32) {
    %c0_i32 = arith.constant 0 : i32
    %c0_i32_0 = arith.constant 0 : i32
    %c0_i32_1 = arith.constant 0 : i32
    return %c0_i32, %c0_i32_0 : i32, i32
  }
  func.func @transform_5(%arg0: i32) -> (i32, i32) {
    %c0_i32 = arith.constant 0 : i32
    %c0_i32_0 = arith.constant 0 : i32
    return %arg0, %c0_i32 : i32, i32
  }
}

</mosaic_0001>

<bundles_post_ra>
// kernel: tpu_custom_call.1
= control target key start
LH: loop header
LB: loop body
LE: loop exit
PB: predicated region body
PF: predicated region fallthrough
CT: control target
= control target key end

     0   :  { %10 = vsyncpa [#allocation3], 0  ;;  %s615_s0 = inlined_call_operand.hbm [shape: f32[16,128], index: 0, kind: input, shape index: {}]   ;;  %s616_s1 = inlined_call_operand.hbm [shape: bf16[128,128], index: 1, kind: input, shape index: {}]   ;;  %s617_s2 = inlined_call_operand.vmem [shape: f32[1,128], index: 2, kind: input, shape index: {}]   ;;  %s618_s3 = inlined_call_operand.hbm [shape: bf16[128,128], index: 3, kind: input, shape index: {}]   ;;  %s619_s4 = inlined_call_operand.vmem [shape: f32[1,128], index: 4, kind: input, shape index: {}]   ;;  %s620_s5 = inlined_call_operand.hbm [shape: f32[16,128], index: 5, kind: output, shape index: {}]  }
   0x1   :  { %11 = vsyncpa [#allocation6], 0 }
   0x2   :  { %12 = vsyncpa [#allocation4], 0  ;;  %s509_s18 = smov [#allocation5]   ;;  %s415_s22 = scalar_lea.hbm %s616_s1, 1024 }
   0x3   :  { %s30_s19 = sshll.u32 %s509_s18, 4  ;;  %p416_p0 = scmp.ne.s32.totalorder %s616_s1, %s415_s22  ;;  %s31_s19 = int_to_ptr.vmem [resolvable:$true] %s30_s19 }
   0x4   :  { %p419_p1 = scmp.lt.u32.totalorder %s415_s22, %s616_s1 }
   0x6   :  { %p421_p2 = pnand %p419_p1, %p416_p0 }
   0x8   :  { %424 = shalt.err (!%p421_p2)
}
   0x9   :  { %s425_s27 = scalar_lea.vmem %s31_s19, 1024  ;;  %p430_p4 = scmp.lt.s32.totalorder %s31_s19, %s31_s19 }
   0xa   :  { %p426_p3 = scmp.ne.s32.totalorder %s31_s19, %s425_s27  ;;  %p431_p5 = scmp.lt.s32.totalorder %s425_s27, %s425_s27 }
   0xc   :  { %p432_p6 = por %p431_p5, %p430_p4 }
   0xe   :  { %p433_p7 = pnand %p432_p6, %p426_p3 }
  0x10   :  { %436 = shalt.err (!%p433_p7)
}
  0x11   :  { %s510_s28 = smov 64   ;;  %s511_s29 = smov 4  }
  0x12   :  { %36 = dma.hbm_to_vmem [thread:$0]  %s616_s1, 1024, %s31_s19, [#allocation6], %s510_s28, %s510_s28, %s511_s29  }
  0x13   :  { %s512_s7 = smov [#allocation2]   ;;  %s437_s11 = scalar_lea.hbm %s615_s0, 256 }
  0x14   :  { %s18_s8 = sshll.u32 %s512_s7, 4  ;;  %p438_p8 = scmp.ne.s32.totalorder %s615_s0, %s437_s11  ;;  %s19_s8 = int_to_ptr.vmem [resolvable:$true] %s18_s8 }
  0x15   :  { %p441_p9 = scmp.lt.u32.totalorder %s437_s11, %s615_s0 }
  0x17   :  { %p443_p10 = pnand %p441_p9, %p438_p8 }
  0x19   :  { %446 = shalt.err (!%p443_p10)
}
  0x1a   :  { %s447_s16 = scalar_lea.vmem %s19_s8, 256  ;;  %p452_p12 = scmp.lt.s32.totalorder %s19_s8, %s19_s8 }
  0x1b   :  { %p448_p11 = scmp.ne.s32.totalorder %s19_s8, %s447_s16  ;;  %p453_p13 = scmp.lt.s32.totalorder %s447_s16, %s447_s16 }
  0x1d   :  { %p454_p0 = por %p453_p13, %p452_p12 }
  0x1f   :  { %p455_p1 = pnand %p454_p0, %p448_p11 }
  0x21   :  { %458 = shalt.err (!%p455_p1)
}
  0x22   :  { %s513_s1 = smov 128   ;;  %s514_s17 = smov 8  }
  0x23   :  { %24 = dma.hbm_to_vmem [thread:$0]  %s615_s0, 256, %s19_s8, [#allocation3], %s513_s1, %s513_s1, %s514_s17  }
  0x24   :  { %s515_s20 = smov [#allocation7]   ;;  %s459_s24 = scalar_lea.hbm %s618_s3, 1024 }
  0x25   :  { %s44_s21 = sshll.u32 %s515_s20, 4  ;;  %p460_p2 = scmp.ne.s32.totalorder %s618_s3, %s459_s24  ;;  %s45_s21 = int_to_ptr.vmem [resolvable:$true] %s44_s21 }
  0x26   :  { %p463_p3 = scmp.lt.u32.totalorder %s459_s24, %s618_s3 }
  0x28   :  { %p465_p4 = pnand %p463_p3, %p460_p2 }
  0x2a   :  { %468 = shalt.err (!%p465_p4)
}
  0x2b   :  { %s469_s6 = scalar_lea.vmem %s45_s21, 1024  ;;  %p474_p6 = scmp.lt.s32.totalorder %s45_s21, %s45_s21 }
  0x2c   :  { %p470_p5 = scmp.ne.s32.totalorder %s45_s21, %s469_s6  ;;  %p475_p7 = scmp.lt.s32.totalorder %s469_s6, %s469_s6 }
  0x2e   :  { %p476_p8 = por %p475_p7, %p474_p6 }
  0x30   :  { %p477_p9 = pnand %p476_p8, %p470_p5 }
  0x32   :  { %480 = shalt.err (!%p477_p9)
}
  0x33   :  { %50 = dma.hbm_to_vmem [thread:$0]  %s618_s3, 1024, %s45_s21, [#allocation6], %s510_s28, %s510_s28, %s511_s29  }
  0x34   :  { %503 = dma.done.wait [#allocation3], 256  }
  0x35   :  { %504 = vsyncadd [#allocation3], 4294967040 }
  0x36   :  { %505 = dma.done.wait [#allocation6], 2048  }
  0x37   :  { %506 = vsyncadd [#allocation6], 4294965248  ;;  %v516_v0 = vmov 0.0   ;;  %vm517_vm0 = vmmov 0   ;;  %v399_v1 = vld [vmem:[#allocation5] sm:$0xff]   ;;  %v400_v2 = vld [vmem:[#allocation5 + $0x8] sm:$0xff]  }
  0x38   :  { %349 = vmatprep.subr.bf16.mxu0 %v516_v0  ;;  %365 = vmatprep.mubr.msk.bf16.mxu0 %vm517_vm0, %v516_v0  ;;  %v401_v3 = vld [vmem:[#allocation5 + $0x10] sm:$0xff]   ;;  %v407_v4 = vld [vmem:[#allocation7] sm:$0xff]   ;;  %v402_v5 = vld [vmem:[#allocation5 + $0x18] sm:$0xff]   ;;  %s518_s9 = smov [#allocation8]  }
  0x39   :  { %369 = vmatprep.subr.bf16.mxu1 %v516_v0  ;;  %385 = vmatprep.mubr.msk.bf16.mxu1 %vm517_vm0, %v516_v0  ;;  %v408_v6 = vld [vmem:[#allocation7 + $0x8] sm:$0xff]   ;;  %v403_v7 = vld [vmem:[#allocation5 + $0x20] sm:$0xff]   ;;  %v409_v8 = vld [vmem:[#allocation7 + $0x10] sm:$0xff]   ;;  %s300_s10 = sshll.u32 %s518_s9, 4  ;;  %s301_s10 = int_to_ptr.vmem [resolvable:$true] %s300_s10 }
  0x3a   :  { %350 = vmatpush3.bf16.msra.mxu0 %v399_v1  ;;  %370 = vmatpush3.bf16.msra.mxu1 %v407_v4  ;;  %v404_v9 = vld [vmem:[#allocation5 + $0x28] sm:$0xff]   ;;  %v410_v10 = vld [vmem:[#allocation7 + $0x18] sm:$0xff]   ;;  %v405_v11 = vld [vmem:[#allocation5 + $0x30] sm:$0xff]   ;;  %p486_p11 = scmp.lt.s32.totalorder %s301_s10, %s301_s10 }
  0x3b   :  { %351 = vmatprep.subr.bf16.mxu0 %v516_v0  ;;  %371 = vmatprep.subr.bf16.mxu1 %v516_v0  ;;  %v411_v12 = vld [vmem:[#allocation7 + $0x20] sm:$0xff]   ;;  %v406_v13 = vld [vmem:[#allocation5 + $0x38] sm:$0xff]   ;;  %v63_v14 = vld [vmem:[#allocation2] sm:$0xff] }
  0x3c   :  { %v64_v15 = vld [vmem:[#allocation2 + $0x8] sm:$0xff]  ;;  %v412_v16 = vld [vmem:[#allocation7 + $0x28] sm:$0xff]   ;;  %v413_v18 = vld [vmem:[#allocation7 + $0x30] sm:$0xff]  }
  0x3d   :  { %v65_v17 = vpack.c.bf16 %v64_v15, %v63_v14  ;;  %v414_v19 = vld [vmem:[#allocation7 + $0x38] sm:$0xff]   ;;  %v313_v20 = vld [vmem:[%s617_s2] ss:$0 sm:$0xff]  ;;  %s481_s2 = scalar_lea.vmem %s301_s10, 256 }
  0x3e   :  { %352 = vmatpush3.bf16.msra.mxu0 %v400_v2  ;;  %372 = vmatpush3.bf16.msra.mxu1 %v408_v6  ;;  %v322_v30 = vld [vmem:[%s619_s4] ss:$0 sm:$0xff]  ;;  %p482_p10 = scmp.ne.s32.totalorder %s301_s10, %s481_s2  ;;  %p487_p12 = scmp.lt.s32.totalorder %s481_s2, %s481_s2 }
  0x3f   :  { %353 = vmatprep.subr.bf16.mxu0 %v516_v0  ;;  %373 = vmatprep.subr.bf16.mxu1 %v516_v0 }
  0x40   :  { %p488_p13 = por %p487_p12, %p486_p11 }
  0x42   :  { %354 = vmatpush3.bf16.msra.mxu0 %v401_v3  ;;  %374 = vmatpush3.bf16.msra.mxu1 %v409_v8  ;;  %p489_p0 = pnand %p488_p13, %p482_p10 }
  0x43   :  { %355 = vmatprep.subr.bf16.mxu0 %v516_v0  ;;  %375 = vmatprep.subr.bf16.mxu1 %v516_v0 }
  0x46   :  { %356 = vmatpush3.bf16.msra.mxu0 %v402_v5  ;;  %376 = vmatpush3.bf16.msra.mxu1 %v410_v10 }
  0x47   :  { %357 = vmatprep.subr.bf16.mxu0 %v516_v0  ;;  %377 = vmatprep.subr.bf16.mxu1 %v516_v0 }
  0x4a   :  { %358 = vmatpush3.bf16.msra.mxu0 %v403_v7  ;;  %378 = vmatpush3.bf16.msra.mxu1 %v411_v12 }
  0x4b   :  { %359 = vmatprep.subr.bf16.mxu0 %v516_v0  ;;  %379 = vmatprep.subr.bf16.mxu1 %v516_v0 }
  0x4e   :  { %360 = vmatpush3.bf16.msra.mxu0 %v404_v9  ;;  %380 = vmatpush3.bf16.msra.mxu1 %v412_v16 }
  0x4f   :  { %361 = vmatprep.subr.bf16.mxu0 %v516_v0  ;;  %381 = vmatprep.subr.bf16.mxu1 %v516_v0 }
  0x52   :  { %362 = vmatpush3.bf16.msra.mxu0 %v405_v11  ;;  %382 = vmatpush3.bf16.msra.mxu1 %v413_v18 }
  0x53   :  { %363 = vmatprep.subr.bf16.mxu0 %v516_v0  ;;  %383 = vmatprep.subr.bf16.mxu1 %v516_v0 }
  0x56   :  { %364 = vmatpush3.bf16.msra.mxu0 %v406_v13  ;;  %384 = vmatpush3.bf16.msra.mxu1 %v414_v19 }
  0x59   :  { %366 = vmatmul.mubr.bf16.vlgmr.msra.gmra.mrb[0].mxu0 %v65_v17 }
 0x12c   :  { %v171_v21 = vpop.f32.mrb[0].mxu0 }
 0x12d   :  { %v172_v22 = vadd.f32 %v313_v20, %v171_v21  ;;  %v367_v23 = vpop.f32.mrb[1].mxu0 }
 0x12e   :  { %v174_v24 = vpop.f32.mrb[2].mxu0 }
 0x12f   :  { %v175_v25 = vadd.f32 %v313_v20, %v174_v24  ;;  %v368_v26 = vpop.f32.mrb[3].mxu0  ;;  %v178_v27 = vmax.f32 %v172_v22, 0.0 }
 0x131   :  { %v179_v28 = vmax.f32 %v175_v25, 0.0 }
 0x133   :  { %v180_v29 = vpack.c.bf16 %v179_v28, %v178_v27 }
 0x135   :  { %386 = vmatmul.mubr.bf16.vlgmr.msra.gmra.mrb[0].mxu1 %v180_v29 }
 0x208   :  { %v286_v31 = vpop.f32.mrb[0].mxu1 }
 0x209   :  { %v287_v32 = vadd.f32 %v322_v30, %v286_v31  ;;  %v387_v33 = vpop.f32.mrb[1].mxu1 }
 0x20a   :  { %v289_v34 = vpop.f32.mrb[2].mxu1 }
 0x20b   :  { %293 = vst [vmem:[#allocation8] sm:$0xff] %v287_v32  ;;  %v290_v35 = vadd.f32 %v322_v30, %v289_v34  ;;  %v388_v36 = vpop.f32.mrb[3].mxu1 }
 0x20d   :  { %294 = vst [vmem:[#allocation8 + $0x8] sm:$0xff] %v290_v35 }
 0x20e   :  { %492 = shalt.err (!%p489_p0)
}
 0x20f   :  { %s493_s12 = scalar_lea.hbm %s620_s5, 256 }
 0x210   :  { %p494_p1 = scmp.ne.s32.totalorder %s620_s5, %s493_s12  ;;  %p497_p2 = scmp.lt.u32.totalorder %s493_s12, %s620_s5 }
 0x212   :  { %p499_p3 = pnand %p497_p2, %p494_p1 }
 0x214   :  { %502 = shalt.err (!%p499_p3)
}
 0x215   :  { %306 = dma.vmem_to_hbm [thread:$0]  %s301_s10, 256, %s620_s5, [#allocation4], %s513_s1, %s513_s1, %s514_s17  }
 0x216   :  { %507 = dma.done.wait [#allocation4], 256  }
 0x217   :  { %508 = vsyncadd [#allocation4], 4294967040 }
 0x218   :  { %310 = vsyncpa [#allocation3], 1 }
 0x219   :  { %311 = vsyncpa [#allocation6], 1 }
 0x21a   :  { %312 = vsyncpa [#allocation4], 1 }

</bundles_post_ra>
